<compile_context>
chip_gen: v5e
topology: v5e:2x2
jax: 0.10.0
libtpu: 0.0.40
codegen_flags: <defaults>
</compile_context>

<pallas_src>
import functools

import numpy as np

import jax
import jax.numpy as jnp
from jax import lax
from jax.experimental import pallas as pl
from jax.experimental.pallas import tpu as pltpu

_VMEM_LIMIT = 32 * 1024 * 1024
_IM2COL_MAX_K = 576   # full im2col when k*k*Cin <= this (all of S2 + S1 layer 0)


def _elu(y):
    # ELU(alpha=1): y if y > 0 else exp(y) - 1  (clamp keeps exp() finite)
    return jnp.where(y > 0, y, jnp.exp(jnp.minimum(y, 0.0)) - 1.0)


def _pool4(y, rh, W, Cout, pool):
    """4x4 / stride-4 pool of y: (rh*W, Cout) covering rh image rows ->
    (rh//4, W//4, Cout)."""
    Wq = W // 4
    y = y.reshape(rh * W // 4, 4, Cout)
    y = jnp.max(y, axis=1) if pool == "max" else jnp.sum(y, axis=1)
    y = y.reshape(rh // 4, 4 * Wq, Cout)
    parts = [y[:, r * Wq:(r + 1) * Wq, :] for r in range(4)]
    if pool == "max":
        return jnp.maximum(jnp.maximum(parts[0], parts[1]),
                           jnp.maximum(parts[2], parts[3]))
    return (parts[0] + parts[1] + parts[2] + parts[3]) * (1.0 / 16.0)


# ----------------------------------------------------------------------------
# Variant A: full im2col — one GEMM, no kh epilogue (3x3 stream + S1 layer 0)
# ----------------------------------------------------------------------------
def _conv_im2col_kernel(q_ref, w_ref, b_ref, o_ref, *, H, W, Cout, pool):
    """q_ref: (1, H*W, k*k*Cin) bf16;  w_ref: (k*k*Cin, Cout) bf16."""
    y = jnp.dot(q_ref[0], w_ref[...], preferred_element_type=jnp.float32)
    y = _elu(y + b_ref[...])
    if pool is None:
        o_ref[...] = y.reshape(1, H, W, Cout)
    else:
        o_ref[...] = _pool4(y, H, W, Cout, pool).reshape(1, H // 4, W // 4, Cout)


# ----------------------------------------------------------------------------
# Variant B: kw in K, kh in 128-aligned N — lane-dense masked kh epilogue
# ----------------------------------------------------------------------------
def _conv_wide_kernel(q_ref, w_ref, b_ref, m_ref, r_ref, o_ref, yall_ref,
                      *, k, H, W, Cout, pool, rb):
    """q_ref   : (1, Hq*W, k*Cin) bf16,  Hq = H + k - 1 (kw taps in K)
    w_ref   : (k*Cin, Npad)     bf16,  col kh*Cout+co = W[kh,kw,ci,co], rest 0
    b_ref   : (1, Cout)         f32
    m_ref   : (k, 128)          f32    per-kh 0/1 lane mask
    r_ref   : (128, Cout)       f32    lane-window fold (selection) matrix
    o_ref   : (1, Ho, Wo, Cout) f32
    yall_ref: (Hq*W, Npad)      f32    scratch with all per-kh partial outputs
    """
    HW = H * W
    # One wide GEMM for every padded row / every kh tap at once.
    yall_ref[...] = jnp.dot(q_ref[0], w_ref[...],
                            preferred_element_type=jnp.float32)
    rh = rb // W
    for blk in range(HW // rb):
        r0 = blk * rb
        acc = None  # (rb, 128) f32, register-resident lane-dense accumulator
        for kh in range(k):
            col = kh * Cout
            a = (col // 128) * 128                      # aligned 128-lane block
            piece = (yall_ref[r0 + kh * W: r0 + kh * W + rb, a:a + 128]
                     * m_ref[kh:kh + 1, :])              # keep only this window
            acc = piece if acc is None else acc + piece
        # Fold the 128 // Cout lane windows with a tiny selection GEMM.
        y = jnp.dot(acc, r_ref[...], preferred_element_type=jnp.float32)
        y = _elu(y + b_ref[...])
        h0 = r0 // W
        if pool is None:
            o_ref[:, h0:h0 + rh, :, :] = y.reshape(1, rh, W, Cout)
        else:
            o_ref[:, h0 // 4:h0 // 4 + rh // 4, :, :] = (
                _pool4(y, rh, W, Cout, pool).reshape(1, rh // 4, W // 4, Cout))


def _row_block(HW, W, pool):
    """Largest ~256-row block that holds whole (pool-)rows and divides HW."""
    unit = 4 * W if pool else W
    rb = max(unit, (256 // unit) * unit)
    rb = min(rb, HW)
    while HW % rb:
        rb -= unit
    return rb


def conv2d_elu(x, w, b, pool=None):
    """'same' conv (stride 1, pad (k-1)//2) + ELU, optionally fused 4x4 pool.

    x: (B, H, W, Cin) f32 NHWC;  w: (k, k, Cin, Cout);  b: (Cout,)
    pool: None | "avg" | "max" (4x4, stride 4, fused into the epilogue).
    """
    B, H, W, Cin = x.shape
    k = w.shape[0]
    Cout = w.shape[3]
    pad = (k - 1) // 2
    assert k % 2 == 1
    if pool is not None:
        assert H % 4 == 0 and W % 4 == 0

    xp = jnp.pad(x.astype(jnp.bfloat16),
                 ((0, 0), (pad, pad), (pad, pad), (0, 0)))

    if k * k * Cin <= _IM2COL_MAX_K:
        # ---- Variant A: full im2col, K = k*k*Cin ----
        cols = [xp[:, kh:kh + H, kw:kw + W, :]
                for kh in range(k) for kw in range(k)]
        q = jnp.concatenate(cols, axis=-1).reshape(B, H * W, k * k * Cin)
        w2 = w.reshape(k * k * Cin, Cout).astype(jnp.bfloat16)
        b2 = b.reshape(1, Cout).astype(jnp.float32)
        Ho, Wo = (H, W) if pool is None else (H // 4, W // 4)
        kernel = functools.partial(_conv_im2col_kernel, H=H, W=W, Cout=Cout,
                                   pool=pool)
        return pl.pallas_call(
            kernel,
            out_shape=jax.ShapeDtypeStruct((B, Ho, Wo, Cout), jnp.float32),
            grid=(B,),
            in_specs=[
                pl.BlockSpec((1, H * W, k * k * Cin), lambda i: (i, 0, 0)),
                pl.BlockSpec((k * k * Cin, Cout), lambda i: (0, 0)),
                pl.BlockSpec((1, Cout), lambda i: (0, 0)),
            ],
            out_specs=pl.BlockSpec((1, Ho, Wo, Cout), lambda i: (i, 0, 0, 0)),
            compiler_params=pltpu.CompilerParams(
                dimension_semantics=("parallel",),
                vmem_limit_bytes=_VMEM_LIMIT),
        )(q, w2, b2)

    # ---- Variant B: kw in K, kh in 128-aligned N ----
    assert Cout <= 128 and 128 % Cout == 0
    Hq = H + k - 1
    # TODO(synk): q is still materialized in HBM by one XLA fusion (k-fold
    # expansion); building it in-kernel would need lane-offset concatenation of
    # Cin-wide pieces and was judged riskier than the win at these sizes.
    q = jnp.concatenate([xp[:, :, i:i + W, :] for i in range(k)], axis=-1)
    q = q.reshape(B, Hq * W, k * Cin)

    npad = ((k * Cout + 127) // 128) * 128
    wkk = w.transpose(1, 2, 0, 3).reshape(k * Cin, k * Cout)   # [kw*Cin+ci, kh*Cout+co]
    w2 = jnp.pad(wkk, ((0, 0), (0, npad - k * Cout))).astype(jnp.bfloat16)
    b2 = b.reshape(1, Cout).astype(jnp.float32)

    masks = np.zeros((k, 128), np.float32)
    for kh in range(k):
        off = (kh * Cout) % 128
        masks[kh, off:off + Cout] = 1.0
    fold = np.zeros((128, Cout), np.float32)
    fold[np.arange(128), np.arange(128) % Cout] = 1.0

    rb = _row_block(H * W, W, pool)
    Ho, Wo = (H, W) if pool is None else (H // 4, W // 4)
    kernel = functools.partial(_conv_wide_kernel, k=k, H=H, W=W, Cout=Cout,
                               pool=pool, rb=rb)
    return pl.pallas_call(
        kernel,
        out_shape=jax.ShapeDtypeStruct((B, Ho, Wo, Cout), jnp.float32),
        grid=(B,),
        in_specs=[
            pl.BlockSpec((1, Hq * W, k * Cin), lambda i: (i, 0, 0)),
            pl.BlockSpec((k * Cin, npad), lambda i: (0, 0)),
            pl.BlockSpec((1, Cout), lambda i: (0, 0)),
            pl.BlockSpec((k, 128), lambda i: (0, 0)),
            pl.BlockSpec((128, Cout), lambda i: (0, 0)),
        ],
        out_specs=pl.BlockSpec((1, Ho, Wo, Cout), lambda i: (i, 0, 0, 0)),
        scratch_shapes=[pltpu.VMEM((Hq * W, npad), jnp.float32)],
        compiler_params=pltpu.CompilerParams(
            dimension_semantics=("parallel",),
            vmem_limit_bytes=_VMEM_LIMIT),
    )(q, w2, b2, jnp.asarray(masks), jnp.asarray(fold))


# ----------------------------------------------------------------------------
# Fused FC tail: L1 / L2 (Linear+BN+ReLU), concat, FC1 (Linear+BN+ReLU), FC2
# ----------------------------------------------------------------------------
def _fc_tail_kernel(x1_ref, x2_ref, w1_ref, s1_ref, t1_ref,
                    w2_ref, s2_ref, t2_ref, w3a_ref, w3b_ref, s3_ref, t3_ref,
                    w4_ref, b4_ref, o_ref):
    y1 = jnp.dot(x1_ref[...], w1_ref[...], preferred_element_type=jnp.float32)
    y1 = jnp.maximum(y1 * s1_ref[...] + t1_ref[...], 0.0)
    y2 = jnp.dot(x2_ref[...], w2_ref[...], preferred_element_type=jnp.float32)
    y2 = jnp.maximum(y2 * s2_ref[...] + t2_ref[...], 0.0)
    # concat([y1, y2]) @ w3  ==  y1 @ w3[:half] + y2 @ w3[half:]
    h = (jnp.dot(y1.astype(jnp.bfloat16), w3a_ref[...],
                 preferred_element_type=jnp.float32)
         + jnp.dot(y2.astype(jnp.bfloat16), w3b_ref[...],
                   preferred_element_type=jnp.float32))
    h = jnp.maximum(h * s3_ref[...] + t3_ref[...], 0.0)
    o_ref[...] = (jnp.dot(h.astype(jnp.bfloat16), w4_ref[...],
                          preferred_element_type=jnp.float32) + b4_ref[...])


def fc_tail(params, x1, x2):
    """x1, x2: NHWC conv-stream outputs (B, Hf, Wf, C).  The torch CHW-flatten
    ordering is folded into a row permutation of the L1/L2 weights."""
    B, Hf, Wf, C = x1.shape
    feat = Hf * Wf * C
    w1, s1, t1 = params["L1"]
    w2, s2, t2 = params["L2"]
    w3, s3, t3 = params["FC1"]
    w4, b4 = params["FC2"]
    half = w1.shape[1]
    nc = w4.shape[1]

    def to_hwc_rows(wm):
        # torch flattens NCHW -> rows ordered (c,h,w); our NHWC flatten is (h,w,c)
        return wm.reshape(C, Hf, Wf, -1).transpose(1, 2, 0, 3).reshape(feat, -1)

    x1f = x1.reshape(B, feat).astype(jnp.bfloat16)
    x2f = x2.reshape(B, feat).astype(jnp.bfloat16)
    args = (x1f, x2f,
            to_hwc_rows(w1).astype(jnp.bfloat16),
            s1.reshape(1, -1), t1.reshape(1, -1),
            to_hwc_rows(w2).astype(jnp.bfloat16),
            s2.reshape(1, -1), t2.reshape(1, -1),
            w3[:half].astype(jnp.bfloat16), w3[half:].astype(jnp.bfloat16),
            s3.reshape(1, -1), t3.reshape(1, -1),
            w4.astype(jnp.bfloat16), b4.reshape(1, -1))
    return pl.pallas_call(
        _fc_tail_kernel,
        out_shape=jax.ShapeDtypeStruct((B, nc), jnp.float32),
        grid=(1,),
        in_specs=[pl.BlockSpec(a.shape, lambda i: (0, 0)) for a in args],
        out_specs=pl.BlockSpec((B, nc), lambda i: (0, 0)),
        compiler_params=pltpu.CompilerParams(
            dimension_semantics=("arbitrary",),
            vmem_limit_bytes=_VMEM_LIMIT),
    )(*args)


# ----------------------------------------------------------------------------
# Parameters (deterministic, synthetic — mirrors module __init__ shapes)
# ----------------------------------------------------------------------------
def init_params(key, nb_classes, input_size, input_channel):
    eps = 1e-5
    feat = int(input_size / 64 * input_size / 64 * 64)
    keys = iter(jax.random.split(key, 32))

    def conv_p(k, cin, cout):
        std = (2.0 / (k * k * cout)) ** 0.5   # kaiming_normal_(fan_out, relu)
        w = jax.random.normal(next(keys), (k, k, cin, cout), jnp.float32) * std
        return w, jnp.zeros((cout,), jnp.float32)

    def linear_bn_p(din, dout):
        w = jax.random.normal(next(keys), (din, dout), jnp.float32) * 0.01
        b = jnp.zeros((dout,), jnp.float32)
        gamma = jnp.ones((dout,), jnp.float32)
        beta = jnp.zeros((dout,), jnp.float32)
        rmean = jnp.zeros((dout,), jnp.float32)
        rvar = jnp.ones((dout,), jnp.float32)
        scale = gamma / jnp.sqrt(rvar + eps)
        shift = scale * b + (beta - rmean * scale)   # Linear bias folded in
        return w, scale, shift

    def linear_p(din, dout):
        w = jax.random.normal(next(keys), (din, dout), jnp.float32) * 0.01
        return w, jnp.zeros((dout,), jnp.float32)

    chans = [(input_channel, 16), (16, 16), (16, 32), (32, 32), (32, 64), (64, 64)]
    return {
        "S1": [conv_p(13, ci, co) for ci, co in chans],
        "S2": [conv_p(3, ci, co) for ci, co in chans],
        "L1": linear_bn_p(feat, feat // 2),
        "L2": linear_bn_p(feat, feat // 2),
        "FC1": linear_bn_p(feat, feat // 4),
        "FC2": linear_p(feat // 4, nb_classes),
    }


# ----------------------------------------------------------------------------
# Forward pass (matches dualCNN.forward)
# ----------------------------------------------------------------------------
def dual_cnn_forward(params, x_nchw):
    x = jnp.transpose(x_nchw, (0, 2, 3, 1)).astype(jnp.float32)  # NCHW -> NHWC

    def stream(convs, pool_op):
        h = x
        for idx, (w, b) in enumerate(convs):
            # TODO(synk): fuse each conv+conv+pool pair into one pallas_call to
            # halve conv dispatches (intermediate fits VMEM).
            h = conv2d_elu(h, w, b, pool=pool_op if idx % 2 == 1 else None)
        return h

    x1 = stream(params["S1"], "avg")
    x2 = stream(params["S2"], "max")
    # CHW-flatten ordering handled inside fc_tail via weight-row permutation.
    return fc_tail(params, x1, x2)


# ----------------------------------------------------------------------------
# Reference (pure JAX) used only for sanity checks of the conv kernels
# ----------------------------------------------------------------------------
def _conv_reference(x, w, b, pool):
    k = w.shape[0]
    pad = (k - 1) // 2
    y = lax.conv_general_dilated(
        x, w, window_strides=(1, 1), padding=[(pad, pad), (pad, pad)],
        dimension_numbers=("NHWC", "HWIO", "NHWC"))
    y = _elu(y + b.reshape(1, 1, 1, -1))
    if pool is not None:
        B, H, W, C = y.shape
        yw = y.reshape(B, H // 4, 4, W // 4, 4, C)
        y = jnp.max(yw, axis=(2, 4)) if pool == "max" else jnp.mean(yw, axis=(2, 4))
    return y


# ----------------------------------------------------------------------------
if __name__ == "__main__":
    key = jax.random.PRNGKey(0)

    # Correctness checks for both conv-kernel variants (bf16 => loose tol).
    #   (k, cin, cout, spatial, pool)
    tests = [(3, 4, 8, 8, None),      # variant A
             (3, 4, 8, 8, "max"),     # variant A + fused pool
             (13, 4, 8, 8, None),     # variant B, single row block
             (13, 4, 8, 32, "avg")]   # variant B, 4 row blocks + fused pool
    for (kk, cin, cout, sp, pool) in tests:
        key, k1, k2, k3 = jax.random.split(key, 4)
        xc = jax.random.normal(k1, (2, sp, sp, cin), jnp.float32)
        wc = jax.random.normal(k2, (kk, kk, cin, cout), jnp.float32) * 0.05
        bc = jax.random.normal(k3, (cout,), jnp.float32) * 0.1
        got = conv2d_elu(xc, wc, bc, pool=pool)
        want = _conv_reference(xc, wc, bc, pool)
        assert got.shape == want.shape, (got.shape, want.shape)
        err = float(jnp.max(jnp.abs(got - want)))
        assert err < 0.5, f"conv check failed (k={kk}, sp={sp}, pool={pool}): err={err}"

    # Full model: input_size must be a multiple of 64 (three 4x4 pools).
    B, C, S = 2, 3, 64
    nb_classes = 10
    key, kx, kp = jax.random.split(key, 3)
    x = jax.random.normal(kx, (B, C, S, S), jnp.float32)
    params = init_params(kp, nb_classes=nb_classes, input_size=S, input_channel=C)

    fwd = jax.jit(dual_cnn_forward)
    out = jax.block_until_ready(fwd(params, x))

    assert out.shape == (B, nb_classes), out.shape
    assert bool(jnp.all(jnp.isfinite(out)))
    print("KERNEL_OK")
</pallas_src>

<mosaic_0001>
module attributes {stable_mosaic.version = 11 : i64} {
  func.func @_conv_im2col_kernel(%arg0: i32, %arg1: memref<1x64x36xbf16, #tpu.memory_space<vmem>>, %arg2: memref<36x8xbf16, #tpu.memory_space<vmem>>, %arg3: memref<1x8xf32, #tpu.memory_space<vmem>>, %arg4: memref<1x8x8x8xf32, #tpu.memory_space<vmem>>) attributes {dimension_semantics = [#tpu.dimension_semantics<parallel>], iteration_bounds = array<i64: 2>, scalar_prefetch = 0 : i64, scratch_operands = 0 : i64, tpu.core_type = #tpu.core_type<tc>, window_params = [{transform_indices = @transform_0, window_bounds = array<i64: 1, 64, 36>}, {pipeline_mode = #tpu.pipeline_mode<synchronous>, transform_indices = @transform_1, window_bounds = array<i64: 36, 8>}, {pipeline_mode = #tpu.pipeline_mode<synchronous>, transform_indices = @transform_2, window_bounds = array<i64: 1, 8>}, {transform_indices = @transform_3, window_bounds = array<i64: 1, 8, 8, 8>}]} {
    %c0 = arith.constant 0 : index
    %c0_0 = arith.constant 0 : index
    %c0_1 = arith.constant 0 : index
    %0 = vector.load %arg1[%c0, %c0_0, %c0_1] : memref<1x64x36xbf16, #tpu.memory_space<vmem>>, vector<1x64x36xbf16>
    %1 = vector.shape_cast %0 : vector<1x64x36xbf16> to vector<64x36xbf16>
    %c0_2 = arith.constant 0 : index
    %c0_3 = arith.constant 0 : index
    %2 = vector.load %arg2[%c0_2, %c0_3] : memref<36x8xbf16, #tpu.memory_space<vmem>>, vector<36x8xbf16>
    %cst = arith.constant dense<0.000000e+00> : vector<64x8xf32>
    %3 = tpu.matmul %1, %2, %cst {dimension_numbers = #tpu.dot_dimension_numbers<[1], [0], [0], [1], [0, 0, 1, 1], [], []>} : vector<64x36xbf16>, vector<36x8xbf16>, vector<64x8xf32> -> vector<64x8xf32>
    %c0_4 = arith.constant 0 : index
    %c0_5 = arith.constant 0 : index
    %4 = vector.load %arg3[%c0_4, %c0_5] : memref<1x8xf32, #tpu.memory_space<vmem>>, vector<1x8xf32>
    %5 = vector.broadcast %4 : vector<1x8xf32> to vector<64x8xf32>
    %6 = arith.addf %3, %5 : vector<64x8xf32>
    %cst_6 = arith.constant 0.000000e+00 : f32
    %7 = vector.broadcast %cst_6 : f32 to vector<64x8xf32>
    %8 = arith.cmpf ogt, %6, %7 : vector<64x8xf32>
    %cst_7 = arith.constant 0.000000e+00 : f32
    %9 = vector.broadcast %cst_7 : f32 to vector<64x8xf32>
    %10 = arith.minimumf %6, %9 : vector<64x8xf32>
    %11 = math.exp %10 : vector<64x8xf32>
    %cst_8 = arith.constant 1.000000e+00 : f32
    %12 = vector.broadcast %cst_8 : f32 to vector<64x8xf32>
    %13 = arith.subf %11, %12 : vector<64x8xf32>
    %14 = arith.select %8, %6, %13 : vector<64x8xi1>, vector<64x8xf32>
    %15 = vector.shape_cast %14 : vector<64x8xf32> to vector<1x8x8x8xf32>
    %c0_9 = arith.constant 0 : index
    %c0_10 = arith.constant 0 : index
    %c0_11 = arith.constant 0 : index
    %c0_12 = arith.constant 0 : index
    %16 = vector.load %arg4[%c0_9, %c0_10, %c0_11, %c0_12] : memref<1x8x8x8xf32, #tpu.memory_space<vmem>>, vector<1x8x8x8xf32>
    tpu.vector_store %arg4[%c0_9, %c0_10, %c0_11, %c0_12], %15 {strides = array<i32>} : memref<1x8x8x8xf32, #tpu.memory_space<vmem>>, vector<1x8x8x8xf32>,
    return
  }
  func.func @transform_0(%arg0: i32) -> (i32, i32, i32) {
    %c0_i32 = arith.constant 0 : i32
    %c0_i32_0 = arith.constant 0 : i32
    %c0_i32_1 = arith.constant 0 : i32
    return %arg0, %c0_i32, %c0_i32_0 : i32, i32, i32
  }
  func.func @transform_1(%arg0: i32) -> (i32, i32) {
    %c0_i32 = arith.constant 0 : i32
    %c0_i32_0 = arith.constant 0 : i32
    %c0_i32_1 = arith.constant 0 : i32
    return %c0_i32, %c0_i32_0 : i32, i32
  }
  func.func @transform_2(%arg0: i32) -> (i32, i32) {
    %c0_i32 = arith.constant 0 : i32
    %c0_i32_0 = arith.constant 0 : i32
    %c0_i32_1 = arith.constant 0 : i32
    return %c0_i32, %c0_i32_0 : i32, i32
  }
  func.func @transform_3(%arg0: i32) -> (i32, i32, i32, i32) {
    %c0_i32 = arith.constant 0 : i32
    %c0_i32_0 = arith.constant 0 : i32
    %c0_i32_1 = arith.constant 0 : i32
    %c0_i32_2 = arith.constant 0 : i32
    return %arg0, %c0_i32, %c0_i32_0, %c0_i32_1 : i32, i32, i32, i32
  }
}

</mosaic_0001>

<bundles_post_ra>
// kernel: tpu_custom_call.1
= control target key start
LH: loop header
LB: loop body
LE: loop exit
PB: predicated region body
PF: predicated region fallthrough
CT: control target
= control target key end

     0   :  { %8 = vsyncpa [#allocation3], 0  ;;  %s732_s0 = inlined_call_operand.vmem [shape: bf16[2,64,36], index: 0, kind: input, shape index: {}]   ;;  %s733_s1 = inlined_call_operand.vmem [shape: bf16[36,8], index: 1, kind: input, shape index: {}]   ;;  %s734_s2 = inlined_call_operand.vmem [shape: f32[1,8], index: 2, kind: input, shape index: {}]   ;;  %s735_s3 = inlined_call_operand.hbm [shape: f32[2,8,8,8], index: 3, kind: output, shape index: {}]  }
   0x1   :  { %10 = vsyncpa [#allocation3 + $0x1], 0  ;;  %s612_s12 = smov 0   ;;  %s614_s13 = smov 0  }
   0x2   :  { %s616_s14 = smov 0   ;;  %s618_s15 = smov 0  }
   0x3 LB: > { %s633_s16 = sadd.s32 4294967295, %s588_s15   ;;  %s403_s17 = sadd.s32 4294967294, %s588_s15   ;;  %s588_s15 = sphi %s618_s15, %s741_s15   ;;  %s584_s14 = sphi %s616_s14, %s740_s14   ;;  %s580_s13 = sphi %s614_s13, %s739_s13   ;;  %s576_s12 = sphi %s612_s12, %s738_s12  }
   0x4   : > { %s637_s18 = sadd.s32 1, %s588_s15   ;;  %s91_s19 = sadd.s32 1, %s584_s14 }
   0x5   : > { %s88_s20 = ssub.s32 %s588_s15, %s637_s18  ;;  %p101_p0 = scmp.ne.s32.totalorder %s584_s14, %s580_s13 }
   0x6   : > { %p89_p1 = scmp.eq.s32.totalorder %s88_s20, 0  ;;  %p102_p2 = scmp.eq.s32.totalorder %s633_s16, 1 }
   0x7   : > { %p107_p3 = scmp.ne.s32.totalorder %s580_s13, %s576_s12  ;;  %p108_p4 = scmp.eq.s32.totalorder %s403_s17, 1 }
   0x8   : > { %s648_s21 = scalar_select %p89_p1, %s584_s14, %s91_s19  }
   0x9   : > { %p650_p5 = por %p102_p2, %p101_p0  ;;  %p654_p6 = por %p108_p4, %p107_p3 }
   0xa   : > { %p406_p7 = scmp.ge.s32.totalorder %s588_s15, 1  ;;  %p140_p8 = scmp.lt.s32.totalorder %s588_s15, 3 }
   0xc   : > { %p141_p9 = pnand %p406_p7, %p140_p8 }
   0xd   : > { %p164_p10 = scmp.lt.s32.totalorder (!%p141_p9), %s633_s16, 1  ;;  %s161_s10 = sand.u32 (!%p141_p9), 1, %s580_s13  }
   0xe   : > { %144 = sbr.rel (%p141_p9) target bundleno = 198 (0xc6), region = 32  ;;  %s407_s11 = sshll.u32 (!%p141_p9), %s161_s10, 6 }
   0xf   : > { %s680_s17 = scalar_lea.vmem (!%p141_p9), [#allocation2], %s407_s11  ;;  %s458_s19 = sshll.u32 (!%p141_p9), %s633_s16, 6 }
  0x10   : > { %s338_s25 = sshll.u32 (!%p141_p9), %s680_s17, 4  ;;  %s326_s27 = scalar_lea.sflag (!%p141_p9), [#allocation3], %s161_s10  ;;  %s339_s25 = int_to_ptr.vmem [resolvable:$true] %s338_s25 }
  0x11   : > { %s546_s5 = scalar_lea.hbm (!%p141_p9), %s735_s3, 128 }
  0x13   : > { %v182_v0 = vld [vmem:[%s733_s1 + $0x10] sm:$0x3]  ;;  %vm235_vm0 = vcmask 1041408   ;;  %s165_s26 = scalar_select %p164_p10, %s633_s16, 1  ;;  %v457_v4 = vld [vmem:[%s733_s1 + $0x8] sm:$0xff]  ;;  %v456_v5 = vld [vmem:[%s733_s1] sm:$0xff] }
  0x14   : > { %v216_v1 = vunpack.c.l.b16 %v182_v0  ;;  %vm222_vm1 = vcmask 293888   ;;  %v509_v10 = vld [vmem:[%s734_s2] ss:$0 sm:$0xff]  ;;  %vm316_vm2 = vcmask 64512   ;;  %s337_s16 = scalar_lea.hbm %s735_s3, %s458_s19 }
  0x15   : > { %s451_s29 = sshll.u32 %s165_s26, 5  ;;  %s340_s26 = sshll.u32 %s337_s16, 4  ;;  %s341_s26 = int_to_ptr.hbm [resolvable:$true] %s340_s26 }
  0x16   : > { %v219_v2 = vpack.c.b16 %v216_v1, %v216_v1  ;;  %s168_s7 = scalar_lea.vmem %s732_s0, %s451_s29  ;;  %s540_s28 = sshra.s32 %s341_s26, 4  ;;  %s541_s28 = int_to_ptr.hbm [resolvable:$true] %s540_s28 }
  0x17   : > { %v452_v6 = vld [vmem:[%s168_s7] sm:$0xff]  ;;  %v453_v7 = vld [vmem:[%s168_s7 + $0x8] sm:$0xff]  ;;  %v454_v8 = vld [vmem:[%s168_s7 + $0x10] sm:$0xff]  ;;  %s542_s29 = scalar_lea.hbm %s541_s28, 64  ;;  %p547_p0 = scmp.lt.s32.totalorder %s541_s28, %s735_s3 }
  0x18   : > { %v237_v3 = vsel %vm235_vm0, %v219_v2, 0  ;;  %v455_v9 = vld [vmem:[%s168_s7 + $0x18] sm:$0xff]  ;;  %p543_p11 = scmp.ne.s32.totalorder %s541_s28, %s542_s29  ;;  %p548_p1 = scmp.lt.s32.totalorder %s546_s5, %s542_s29 }
  0x19   : > { %244 = vmatpush.bf16.msra.mxu0 %v237_v3  ;;  %459 = vmatpush.bf16.msra.mxu1 %v237_v3 }
  0x1a   : > { %460 = vmatpush.bf16.msra.mxu2 %v237_v3  ;;  %461 = vmatpush.bf16.msra.mxu3 %v237_v3  ;;  %p544_p12 = pnand %p543_p11, %p650_p5  ;;  %p549_p2 = por %p548_p1, %p547_p0 }
  0x1c   : > { %p545_p13 = pneg %p544_p12 }
  0x1d   : > { %245 = vmatpush.bf16.msra.mxu0 %v457_v4  ;;  %462 = vmatpush.bf16.msra.mxu1 %v457_v4 }
  0x1e   : > { %463 = vmatpush.bf16.msra.mxu2 %v457_v4  ;;  %464 = vmatpush.bf16.msra.mxu3 %v457_v4  ;;  %p550_p3 = pnand %p549_p2, %p545_p13 }
  0x21   : > { %246 = vmatpush.bf16.msra.mxu0 %v456_v5  ;;  %465 = vmatpush.bf16.msra.mxu1 %v456_v5 }
  0x22   : > { %466 = vmatpush.bf16.msra.mxu2 %v456_v5  ;;  %467 = vmatpush.bf16.msra.mxu3 %v456_v5 }
  0x24   : > { %434 = vmatmul.msk.bf16.vlgmr.msra.gmra.mxu0 %vm222_vm1, %v452_v6  ;;  %435 = vmatmul.msk.bf16.vlgmr.msra.gmra.mxu1 %vm222_vm1, %v453_v7 }
  0x25   : > { %436 = vmatmul.msk.bf16.vlgmr.msra.gmra.mxu2 %vm222_vm1, %v454_v8  ;;  %437 = vmatmul.msk.bf16.vlgmr.msra.gmra.mxu3 %vm222_vm1, %v455_v9 }
  0xa1   : > { %v248_v11 = vpop.f32.mrf.mxu0  ;;  %v253_v12 = vpop.f32.mrf.mxu1 }
  0xa2   : > { %v249_v13 = vadd.f32 %v509_v10, %v248_v11  ;;  %v254_v14 = vadd.f32 %v509_v10, %v253_v12 }
  0xa4   : > { %v276_v15 = vmin.f32 %v249_v13, 0.0  ;;  %v278_v16 = vmin.f32 %v254_v14, 0.0  ;;  %vm268_vm3 = vcmp.gt.f32.partialorder %v249_v13, 0.0  ;;  %vm270_vm4 = vcmp.gt.f32.partialorder %v254_v14, 0.0 }
  0xa6   : > { %v284_v17 = vmul.f32 1.442695, %v276_v15  ;;  %v288_v18 = vmul.f32 1.442695, %v278_v16 }
  0xa8   : > { %510 = vpow2.f32 %v284_v17  ;;  %v258_v19 = vpop.f32.mrf.mxu2  ;;  %v263_v20 = vpop.f32.mrf.mxu3 }
  0xa9   : > { %512 = vpow2.f32 %v288_v18  ;;  %v259_v21 = vadd.f32 %v509_v10, %v258_v19  ;;  %v264_v22 = vadd.f32 %v509_v10, %v263_v20  ;;  %v250_v23 = vpop.f32.mrf.mxu0  ;;  %v255_v24 = vpop.f32.mrf.mxu1 }
  0xaa   : > { %v251_v25 = vadd.f32 %v509_v10, %v250_v23  ;;  %v256_v26 = vadd.f32 %v509_v10, %v255_v24 }
  0xab   : > { %v280_v27 = vmin.f32 %v259_v21, 0.0  ;;  %v282_v28 = vmin.f32 %v264_v22, 0.0  ;;  %vm272_vm5 = vcmp.gt.f32.partialorder %v259_v21, 0.0  ;;  %vm274_vm6 = vcmp.gt.f32.partialorder %v264_v22, 0.0 }
  0xac   : > { %v277_v29 = vmin.f32 %v251_v25, 0.0  ;;  %v279_v30 = vmin.f32 %v256_v26, 0.0  ;;  %vm269_vm7 = vcmp.gt.f32.partialorder %v251_v25, 0.0  ;;  %vm271_vm8 = vcmp.gt.f32.partialorder %v256_v26, 0.0 }
  0xad   : > { %v292_v31 = vmul.f32 1.442695, %v280_v27  ;;  %v296_v32 = vmul.f32 1.442695, %v282_v28 }
  0xae   : > { %v511_v33 = vpop.eup %510  ;;  %v286_v34 = vmul.f32 1.442695, %v277_v29  ;;  %v290_v35 = vmul.f32 1.442695, %v279_v30 }
  0xaf   : > { %v513_v36 = vpop.eup %512  ;;  %v438_v37 = vadd.f32 -1.0, %v511_v33  ;;  %514 = vpow2.f32 %v292_v31 }
  0xb0   : > { %v440_v38 = vadd.f32 -1.0, %v513_v36  ;;  %516 = vpow2.f32 %v296_v32  ;;  %v260_v39 = vpop.f32.mrf.mxu2  ;;  %v265_v40 = vpop.f32.mrf.mxu3 }
  0xb1   : > { %v308_v41 = vsel %vm268_vm3, %v249_v13, %v438_v37  ;;  %518 = vpow2.f32 %v286_v34  ;;  %v261_v42 = vadd.f32 %v509_v10, %v260_v39  ;;  %v266_v43 = vadd.f32 %v509_v10, %v265_v40 }
  0xb2   : > { %317 = vst.msk [vmem:[%s680_s17] sm:$0xff] %vm316_vm2, %v308_v41  ;;  %v310_v44 = vsel %vm270_vm4, %v254_v14, %v440_v38  ;;  %520 = vpow2.f32 %v290_v35 }
  0xb3   : > { %319 = vst.msk [vmem:[%s680_s17 + $0x10] sm:$0xff] %vm316_vm2, %v310_v44  ;;  %v281_v45 = vmin.f32 %v261_v42, 0.0  ;;  %v283_v46 = vmin.f32 %v266_v43, 0.0  ;;  %vm273_vm9 = vcmp.gt.f32.partialorder %v261_v42, 0.0  ;;  %vm275_vm10 = vcmp.gt.f32.partialorder %v266_v43, 0.0 }
  0xb5   : > { %v515_v47 = vpop.eup %514  ;;  %v294_v48 = vmul.f32 1.442695, %v281_v45  ;;  %v298_v49 = vmul.f32 1.442695, %v283_v46 }
  0xb6   : > { %v517_v50 = vpop.eup %516  ;;  %v442_v51 = vadd.f32 -1.0, %v515_v47 }
  0xb7   : > { %v519_v52 = vpop.eup %518  ;;  %v444_v53 = vadd.f32 -1.0, %v517_v50  ;;  %522 = vpow2.f32 %v294_v48 }
  0xb8   : > { %v521_v54 = vpop.eup %520  ;;  %v312_v55 = vsel %vm272_vm5, %v259_v21, %v442_v51  ;;  %v439_v56 = vadd.f32 -1.0, %v519_v52  ;;  %524 = vpow2.f32 %v298_v49 }
  0xb9   : > { %321 = vst.msk [vmem:[%s680_s17 + $0x20] sm:$0xff] %vm316_vm2, %v312_v55  ;;  %v314_v57 = vsel %vm274_vm6, %v264_v22, %v444_v53  ;;  %v441_v58 = vadd.f32 -1.0, %v521_v54 }
  0xba   : > { %323 = vst.msk [vmem:[%s680_s17 + $0x30] sm:$0xff] %vm316_vm2, %v314_v57  ;;  %v309_v59 = vsel %vm269_vm7, %v251_v25, %v439_v56 }
  0xbb   : > { %318 = vst.msk [vmem:[%s680_s17 + $0x8] sm:$0xff] %vm316_vm2, %v309_v59  ;;  %v311_v60 = vsel %vm271_vm8, %v256_v26, %v441_v58 }
  0xbc   : > { %320 = vst.msk [vmem:[%s680_s17 + $0x18] sm:$0xff] %vm316_vm2, %v311_v60 }
  0xbd   : > { %v523_v61 = vpop.eup %522 }
  0xbe   : > { %v525_v62 = vpop.eup %524  ;;  %v443_v63 = vadd.f32 -1.0, %v523_v61 }
  0xbf   : > { %v445_v0 = vadd.f32 -1.0, %v525_v62 }
  0xc0   : > { %v313_v1 = vsel %vm273_vm9, %v261_v42, %v443_v63 }
  0xc1   : > { %322 = vst.msk [vmem:[%s680_s17 + $0x28] sm:$0xff] %vm316_vm2, %v313_v1  ;;  %v315_v2 = vsel %vm275_vm10, %v266_v43, %v445_v0 }
  0xc2   : > { %324 = vst.msk [vmem:[%s680_s17 + $0x38] sm:$0xff] %vm316_vm2, %v315_v2 }
  0xc3   : > { %553 = shalt.err (!%p550_p3)
}
  0xc4   : > { %s590_s8 = smov 128   ;;  %s591_s9 = smov 8  }
  0xc5   : > { %468 = dma.vmem_to_hbm [thread:$0]  (%p650_p5), %s339_s25, 1024, %s341_s26, %s326_s27, %s590_s8, %s590_s8, %s591_s9  }
  0xc6 PF: > { %p474_p4 = scmp.ge.s32.totalorder %s588_s15, 2  ;;  %s355_s10 = sand.u32 1, %s576_s12  }
  0xc7   : > { %s356_s11 = scalar_lea.sflag [#allocation3], %s355_s10 }
  0xc8   : > { %p471_p7 = pnand %p474_p4, %p654_p6 }
  0xca   : > { %p472_p8 = pneg %p471_p7 }
  0xcc   : > { %571 = dma.done.wait (%p472_p8), %s356_s11, 1024  }
  0xcd   : > { %573 = vsyncadd (%p472_p8), %s356_s11, 4294966272  ;;  %p13_p9 = scmp.ge.s32.totalorder %s637_s18, 4   ;;  %s738_s12 = smov %s580_s13 }
  0xce   : > { %s739_s13 = smov %s584_s14  ;;  %s740_s14 = smov %s648_s21 }
  0xcf   : > { %s741_s15 = smov %s637_s18  ;;  %15 = sbr.rel (!%p13_p9) target bundleno = 3 (0x3), region = 67 }
  0xd4   :  { %362 = vsyncpa [#allocation3], 1 }
  0xd5   :  { %364 = vsyncpa [#allocation3 + $0x1], 1 }

</bundles_post_ra>
